<compile_context>
chip_gen: v7x
topology: tpu7x:2x2x1
jax: 0.10.0
libtpu: 0.0.40
codegen_flags: <defaults>
</compile_context>

<pallas_src>
import math

import jax
import jax.numpy as jnp
from jax.experimental import pallas as pl
from jax.experimental.pallas import tpu as pltpu

_LOG_10000 = math.log(10000.0)


def _time_emb_kernel(t_ref, out_ref):
    # t_ref:   (TILE_N, 1)   f32  -- flattened timesteps (row tile)
    # out_ref: (TILE_N, dim)      -- [sin(t*f) | cos(t*f)] written in ONE store
    dim = out_ref.shape[-1]
    half = dim // 2

    # Column index over the full output width.
    col = jax.lax.broadcasted_iota(jnp.int32, (1, dim), dimension=1)
    is_cos = col >= half

    # Frequency index repeats for the cos half: k in [0, half).
    k = jnp.where(is_cos, col - half, col).astype(jnp.float32)
    # inv_freq[k] = exp(2k * -ln(10000)/dim); dim exp's per grid step (EUP),
    # negligible next to tile_n*dim sin's, and removes a second input stream.
    freq = jnp.exp(k * jnp.float32(-2.0 * _LOG_10000 / dim))      # (1, dim)

    # cos(x) == sin(x + pi/2): one full-width sin evaluation, one range
    # reduction per element, one unmasked lane-dense store.
    phase = jnp.where(is_cos, jnp.float32(0.5 * math.pi), jnp.float32(0.0))

    out_ref[...] = jnp.sin(t_ref[...] * freq + phase).astype(out_ref.dtype)


def _reference(t, dim):
    """Pure-JAX reference matching the PyTorch module exactly."""
    shape = t.shape
    inv_freq = jnp.exp(
        jnp.arange(0, dim, 2, dtype=jnp.float32) * (-math.log(10000.0) / dim)
    )
    sinusoid = jnp.outer(t.reshape(-1).astype(jnp.float32), inv_freq)
    pos_emb = jnp.concatenate([jnp.sin(sinusoid), jnp.cos(sinusoid)], axis=-1)
    return pos_emb.reshape(*shape, dim)


def _round_up(x, m):
    return -(-x // m) * m


def time_embedding(t, dim, *, out_dtype=jnp.float32, force_pallas=False):
    """JAX/Pallas equivalent of TimeEmbedding.forward."""
    assert dim % 2 == 0, "dim must be even"
    shape = t.shape
    t_flat = t.reshape(-1).astype(jnp.float32)
    n = t_flat.shape[0]

    # Small-problem fast path: at a few KiB of output, kernel-launch and
    # per-step overhead dominate; a fused XLA elementwise is faster and avoids
    # padding a tiny problem into (8,128) tiles.
    if not force_pallas and (n * dim) <= (1 << 14):
        return _reference(t, dim).astype(out_dtype)

    # Tile selection: ~2 MiB of output per grid step (amortizes the ~0.35 us
    # per-step pipeline overhead; double-buffered input+output tiles stay well
    # under the scoped-VMEM default on v5e/v6e/v7x), capped so grid_n >= 2 and
    # the "parallel" axis can shard across both v7x TensorCores.
    target_bytes = 2 << 20
    tile_n = max(8, (target_bytes // (4 * dim)) // 8 * 8)
    tile_n = min(tile_n, max(8, _round_up(pl.cdiv(n, 2), 8)))   # >= 2 grid steps
    tile_n = min(tile_n, _round_up(n, 8))

    grid_n = pl.cdiv(n, tile_n)
    n_pad = grid_n * tile_n

    # Pad only the (tiny) input so the last block never multiplies garbage.
    # The OUTPUT stays exactly (n, dim): the last block's out-of-bounds rows
    # are clipped by Pallas on write-back, so no post-kernel slice is needed.
    if n_pad != n:
        t_flat = jnp.pad(t_flat, (0, n_pad - n))
    t2d = t_flat.reshape(n_pad, 1)

    out_bytes = jnp.dtype(out_dtype).itemsize
    out = pl.pallas_call(
        _time_emb_kernel,
        out_shape=jax.ShapeDtypeStruct((n, dim), out_dtype),
        grid=(grid_n,),
        in_specs=[pl.BlockSpec((tile_n, 1), lambda i: (i, 0))],
        out_specs=pl.BlockSpec((tile_n, dim), lambda i: (i, 0)),
        compiler_params=pltpu.CompilerParams(
            dimension_semantics=("parallel",),
        ),
        cost_estimate=pl.CostEstimate(
            # sin lowers to a VALU polynomial (~15 ops/elem incl. reduction);
            # only the per-step inv_freq exp hits the EUP.
            flops=n_pad * dim * 15,
            transcendentals=grid_n * dim,
            bytes_accessed=4 * n_pad + out_bytes * n * dim,
        ),
    )(t2d)

    return out.reshape(*shape, dim)


if __name__ == "__main__":
    key = jax.random.PRNGKey(0)

    # Diffusion-style timesteps: (batch=2, seq=8), values in [0, 1000),
    # dim=128 (lane-dense 128-wide output store).  Force the Pallas path so
    # the kernel actually runs at this small demo size.
    dim = 128
    t = jax.random.uniform(key, (2, 8), dtype=jnp.float32) * 1000.0
    out = jax.block_until_ready(time_embedding(t, dim, force_pallas=True))
    ref = _reference(t, dim)
    assert out.shape == (2, 8, dim), out.shape
    # Tolerance: arguments up to ~1000 amplify ulp-level differences between
    # the in-kernel exp/sin(+pi/2) path and XLA's exp/sin/cos.
    assert jnp.allclose(out, ref, atol=1e-3, rtol=1e-3), "mismatch vs reference"

    # Ragged N (3*7 = 21 rows) exercises the padded-input / clipped-output
    # (partial last block) path.
    t2 = jax.random.uniform(jax.random.PRNGKey(1), (3, 7), dtype=jnp.float32) * 1000.0
    out2 = jax.block_until_ready(time_embedding(t2, dim, force_pallas=True))
    ref2 = _reference(t2, dim)
    assert out2.shape == (3, 7, dim), out2.shape
    assert jnp.allclose(out2, ref2, atol=1e-3, rtol=1e-3), "ragged mismatch"

    # Tiny problem (2,4) with dim=32 takes the small-N fast path.
    t3 = jax.random.uniform(jax.random.PRNGKey(2), (2, 4), dtype=jnp.float32) * 1000.0
    out3 = jax.block_until_ready(time_embedding(t3, 32))
    assert out3.shape == (2, 4, 32), out3.shape
    assert jnp.allclose(out3, _reference(t3, 32), atol=1e-3, rtol=1e-3)

    # Optional bf16-output variant (v5e/v6e store-bound relief); looser tol.
    out4 = jax.block_until_ready(
        time_embedding(t, dim, out_dtype=jnp.bfloat16, force_pallas=True)
    )
    assert out4.dtype == jnp.bfloat16
    assert jnp.allclose(out4.astype(jnp.float32), ref, atol=1e-2, rtol=1e-2)

    print("KERNEL_OK")
</pallas_src>

<mosaic_0001>
module attributes {stable_mosaic.version = 11 : i64} {
  func.func @_time_emb_kernel(%arg0: i32, %arg1: memref<8x1xf32, #tpu.memory_space<vmem>>, %arg2: memref<8x128xf32, #tpu.memory_space<vmem>>) attributes {dimension_semantics = [#tpu.dimension_semantics<parallel>], iteration_bounds = array<i64: 2>, scalar_prefetch = 0 : i64, scratch_operands = 0 : i64, tpu.core_type = #tpu.core_type<tc>, window_params = [{transform_indices = @transform_0, window_bounds = array<i64: 8, 1>}, {transform_indices = @transform_1, window_bounds = array<i64: 8, 128>}]} {
    %0 = tpu.iota {dimensions = array<i32: 1>} : vector<1x128xi32>
    %c64_i32 = arith.constant 64 : i32
    %1 = vector.broadcast %c64_i32 : i32 to vector<1x128xi32>
    %2 = arith.cmpi sge, %0, %1 : vector<1x128xi32>
    %c64_i32_0 = arith.constant 64 : i32
    %3 = vector.broadcast %c64_i32_0 : i32 to vector<1x128xi32>
    %4 = arith.subi %0, %3 : vector<1x128xi32>
    %5 = arith.select %2, %4, %0 : vector<1x128xi1>, vector<1x128xi32>
    %6 = arith.sitofp %5 : vector<1x128xi32> to vector<1x128xf32>
    %cst = arith.constant -0.14391157 : f32
    %7 = vector.broadcast %cst : f32 to vector<1x128xf32>
    %8 = arith.mulf %6, %7 : vector<1x128xf32>
    %9 = math.exp %8 : vector<1x128xf32>
    %cst_1 = arith.constant 1.57079637 : f32
    %cst_2 = arith.constant 0.000000e+00 : f32
    %10 = vector.broadcast %cst_1 : f32 to vector<1x128xf32>
    %11 = vector.broadcast %cst_2 : f32 to vector<1x128xf32>
    %12 = arith.select %2, %10, %11 : vector<1x128xi1>, vector<1x128xf32>
    %c0 = arith.constant 0 : index
    %c0_3 = arith.constant 0 : index
    %13 = vector.load %arg1[%c0, %c0_3] : memref<8x1xf32, #tpu.memory_space<vmem>>, vector<8x1xf32>
    %14 = vector.broadcast %13 : vector<8x1xf32> to vector<8x128xf32>
    %15 = vector.broadcast %9 : vector<1x128xf32> to vector<8x128xf32>
    %16 = arith.mulf %14, %15 : vector<8x128xf32>
    %17 = vector.broadcast %12 : vector<1x128xf32> to vector<8x128xf32>
    %18 = arith.addf %16, %17 : vector<8x128xf32>
    %19 = math.sin %18 : vector<8x128xf32>
    %c0_4 = arith.constant 0 : index
    %c0_5 = arith.constant 0 : index
    %20 = vector.load %arg2[%c0_4, %c0_5] : memref<8x128xf32, #tpu.memory_space<vmem>>, vector<8x128xf32>
    tpu.vector_store %arg2[%c0_4, %c0_5], %19 {strides = array<i32>} : memref<8x128xf32, #tpu.memory_space<vmem>>, vector<8x128xf32>,
    return
  }
  func.func @transform_0(%arg0: i32) -> (i32, i32) {
    %c0_i32 = arith.constant 0 : i32
    %c0_i32_0 = arith.constant 0 : i32
    return %arg0, %c0_i32 : i32, i32
  }
  func.func @transform_1(%arg0: i32) -> (i32, i32) {
    %c0_i32 = arith.constant 0 : i32
    %c0_i32_0 = arith.constant 0 : i32
    return %arg0, %c0_i32 : i32, i32
  }
}

</mosaic_0001>

<bundles_post_ra>
// kernel: tpu_custom_call.1
= control target key start
LH: loop header
LB: loop body
LE: loop exit
PB: predicated region body
PF: predicated region fallthrough
CT: control target
= control target key end

     0   :  { %6 = vsyncpa [#allocation3], 0  ;;  %s585_s0 = inlined_call_operand.vmem [shape: f32[16,1], index: 0, kind: input, shape index: {}]   ;;  %s586_s1 = inlined_call_operand.hbm [shape: f32[16,128], index: 1, kind: output, shape index: {}]  }
   0x1   :  { %8 = vsyncpa [#allocation3 + $0x1], 0  ;;  %s464_s6 = smov 0   ;;  %s466_s7 = smov 0  }
   0x2   :  { %s468_s8 = smov 0   ;;  %s470_s9 = smov 0  }
   0x3 LB: > { %s485_s10 = sadd.s32 4294967295, %s443_s9   ;;  %s308_s11 = sadd.s32 4294967294, %s443_s9   ;;  %s443_s9 = sphi %s470_s9, %s592_s9   ;;  %s439_s8 = sphi %s468_s8, %s591_s8   ;;  %s435_s7 = sphi %s466_s7, %s590_s7   ;;  %s431_s6 = sphi %s464_s6, %s589_s6  }
   0x4   : > { %s489_s12 = sadd.s32 1, %s443_s9   ;;  %s47_s13 = sadd.s32 1, %s439_s8 }
   0x5   : > { %s44_s14 = ssub.s32 %s443_s9, %s489_s12  ;;  %p57_p0 = scmp.ne.s32.totalorder %s439_s8, %s435_s7 }
   0x6   : > { %p45_p1 = scmp.eq.s32.totalorder %s44_s14, 0  ;;  %p58_p2 = scmp.eq.s32.totalorder %s485_s10, 1 }
   0x7   : > { %p63_p3 = scmp.ne.s32.totalorder %s435_s7, %s431_s6  ;;  %p64_p4 = scmp.eq.s32.totalorder %s308_s11, 1 }
   0x8   : > { %s500_s15 = scalar_select %p45_p1, %s439_s8, %s47_s13  }
   0x9   : > { %p502_p5 = por %p58_p2, %p57_p0  ;;  %p506_p6 = por %p64_p4, %p63_p3 }
   0xa   : > { %p311_p7 = scmp.ge.s32.totalorder %s443_s9, 1  ;;  %p89_p8 = scmp.lt.s32.totalorder %s443_s9, 3 }
   0xc   : > { %p90_p9 = pnand %p311_p7, %p89_p8 }
   0xd   : > { %p108_p10 = scmp.lt.s32.totalorder (!%p90_p9), %s485_s10, 1  ;;  %v445_v0 = vmov (!%p90_p9), 0   ;;  %v112_v2 = vlaneseq (!%p90_p9)  ;;  %v446_v10 = vmov (!%p90_p9), 0.0   ;;  %v447_v25 = vmov (!%p90_p9), 683565275   ;;  %s105_s23 = sand.u32 (!%p90_p9), 1, %s435_s7  }
   0xe   : > { %93 = sbr.rel (%p90_p9) target bundleno = 251 (0xfb), region = 24  ;;  %374 = vset.pattern.permute.xlu0 (!%p90_p9), %v445_v0  ;;  %v448_v27 = vmov (!%p90_p9), 2475754826   ;;  %v449_v30 = vmov (!%p90_p9), 2131351028   ;;  %s312_s24 = sshll.u32 (!%p90_p9), %s105_s23, 3 }
   0xf   : > { %v113_v3 = vand.u32 (!%p90_p9), 127, %v112_v2  ;;  %v450_v33 = vmov (!%p90_p9), 2102212464   ;;  %v451_v36 = vmov (!%p90_p9), 920167782   ;;  %s320_s25 = sshll.u32 (!%p90_p9), %s485_s10, 7 }
  0x10   : > { %v452_v39 = vmov (!%p90_p9), 1326507024   ;;  %s107_s26 = scalar_lea.vmem (!%p90_p9), [#allocation2], %s312_s24  ;;  %s543_s30 = scalar_lea.hbm (!%p90_p9), %s586_s1, %s320_s25 }
  0x11   : > { %v314_v4 = vadd.s32 (!%p90_p9), 4294967232, %v113_v3  ;;  %vm114_vm0 = vcmp.ge.s32.totalorder (!%p90_p9), %v113_v3, 64  ;;  %s249_s27 = sshll.u32 (!%p90_p9), %s107_s26, 4  ;;  %s236_s2 = scalar_lea.sflag (!%p90_p9), [#allocation3], %s105_s23  ;;  %s545_s27 = int_to_ptr.vmem [resolvable:$true] %s249_s27 }
  0x12   : > { %v121_v11 = vsel (!%p90_p9), %vm114_vm0, 1.5707964, %v446_v10  ;;  %s381_s3 = scalar_lea.vmem (!%p90_p9), %s545_s27, 128  ;;  %s453_s4 = smov (!%p90_p9), [#allocation2]  }
  0x13   : > { %v116_v5 = vsel (!%p90_p9), %vm114_vm0, %v314_v4, %v113_v3  ;;  %p382_p11 = scmp.ne.s32.totalorder (!%p90_p9), %s545_s27, %s381_s3  ;;  %s385_s5 = sshll.u32 (!%p90_p9), %s453_s4, 4  ;;  %s386_s5 = int_to_ptr.vmem [resolvable:$false] %s385_s5 }
  0x14   : > { %v117_v6 = vcvt.s32.f32 (!%p90_p9), %v116_v5  ;;  %p388_p0 = scmp.lt.s32.totalorder (!%p90_p9), %s545_s27, %s386_s5 }
  0x15   : > { %s109_s18 = scalar_select %p108_p10, %s485_s10, 1 }
  0x16   : > { %v118_v7 = vmul.f32 -0.14391157, %v117_v6  ;;  %p383_p12 = pnand %p382_p11, %p502_p5  ;;  %s387_s10 = scalar_lea.vmem %s386_s5, 256 }
  0x17   : > { %s313_s19 = sshll.u32 %s109_s18, 3  ;;  %p389_p1 = scmp.lt.s32.totalorder %s387_s10, %s381_s3 }
  0x18   : > { %s111_s22 = scalar_lea.vmem %s585_s0, %s313_s19  ;;  %v119_v8 = vmul.f32 1.442695, %v118_v7  ;;  %p384_p13 = pneg %p383_p12 }
  0x19   : > { %v122_v1 = vld [vmem:[%s111_s22] sm:$0xff]  ;;  %p390_p2 = por %p389_p1, %p388_p0 }
  0x1a   : > { %125 = vperm.xlu0 %374, %v122_v1   ;;  %375 = vpow2.f32 %v119_v8 }
  0x1b   : > { %p391_p3 = pnand %p390_p2, %p384_p13 }
  0x24   : > { %v376_v9 = vpop.eup %375 }
  0x99   : > { %v126_v12 = vpop.permute.xlu0 %125 }
  0x9a   : > { %v128_v13 = vmul.f32 %v376_v9, %v126_v12 }
  0x9c   : > { %v517_v14 = vadd.f32 %v128_v13, %v121_v11 }
  0x9e   : > { %v133_v15 = vand.u32 2139095040, %v517_v14  ;;  %v130_v19 = vand.u32 2147483647, %v517_v14  ;;  %vm132_vm8 = vcmp.lt.s32.totalorder %v517_v14, 0  ;;  %vm222_vm13 = vweird.f32 %v517_v14 }
  0xa0   : > { %v134_v16 = vshrl.u32 %v133_v15, 23  ;;  %v137_v22 = vand.u32 8388607, %v130_v19  ;;  %vm131_vm9 = vcmp.le.f32.partialorder %v130_v19, 0.7853982 }
  0xa2   : > { %v315_v17 = vadd.s32 4294967169, %v134_v16  ;;  %v138_v41 = vor.u32 8388608, %v137_v22 }
  0xa4   : > { %v140_v18 = vadd.s32 1, %v315_v17  ;;  %v178_v55 = vshll.u32 %v138_v41, 8 }
  0xa6   : > { %vm141_vm1 = vcmp.gt.s32.totalorder %v140_v18, 0 }
  0xa7   : > { %v142_v20 = vsel %vm141_vm1, %v140_v18, 0 }
  0xa8   : > { %v144_v21 = vand.u32 31, %v142_v20  ;;  %v143_v24 = vshrl.u32 %v142_v20, 5 }
  0xaa   : > { %v145_v23 = vsub.s32 32, %v144_v21  ;;  %v147_v26 = vshll.u32 %v447_v25, %v144_v21  ;;  %v150_v28 = vshll.u32 %v448_v27, %v144_v21  ;;  %v153_v32 = vshll.u32 %v449_v30, %v144_v21 }
  0xab   : > { %v156_v35 = vshll.u32 %v450_v33, %v144_v21  ;;  %v159_v38 = vshll.u32 %v451_v36, %v144_v21  ;;  %vm162_vm2 = vcmp.lt.s32.totalorder %v143_v24, 1  ;;  %vm165_vm3 = vcmp.lt.s32.totalorder %v143_v24, 4 }
  0xac   : > { %v148_v29 = vshrl.u32 %v448_v27, %v145_v23  ;;  %v151_v31 = vshrl.u32 %v449_v30, %v145_v23  ;;  %v154_v34 = vshrl.u32 %v450_v33, %v145_v23  ;;  %v157_v37 = vshrl.u32 %v451_v36, %v145_v23 }
  0xad   : > { %v160_v40 = vshrl.u32 %v452_v39, %v145_v23  ;;  %v146_v50 = vshrl.u32 %v447_v25, %v145_v23  ;;  %vm164_vm4 = vcmp.lt.s32.totalorder %v143_v24, 3  ;;  %vm163_vm5 = vcmp.lt.s32.totalorder %v143_v24, 2 }
  0xae   : > { %v149_v42 = vor.u32 %v148_v29, %v147_v26  ;;  %v152_v43 = vor.u32 %v151_v31, %v150_v28  ;;  %v155_v44 = vor.u32 %v154_v34, %v153_v32  ;;  %v158_v45 = vor.u32 %v157_v37, %v156_v35 }
  0xaf   : > { %v161_v46 = vor.u32 %v160_v40, %v159_v38 }
  0xb0   : > { %v167_v47 = vsel %vm165_vm3, %v155_v44, 2102212464  ;;  %v170_v48 = vsel %vm162_vm2, %v149_v42, %v152_v43  ;;  %v174_v49 = vsel %vm162_vm2, %v152_v43, %v155_v44  ;;  %v171_v51 = vsel %vm165_vm3, %v158_v45, 920167782 }
  0xb1   : > { %v175_v52 = vsel %vm165_vm3, %v161_v46, 1326507024  ;;  %v172_v53 = vsel %vm164_vm4, %v155_v44, %v171_v51  ;;  %v166_v56 = vsel %vm162_vm2, %v146_v50, %v149_v42  ;;  %v168_v57 = vsel %vm164_vm4, %v152_v43, %v167_v47 }
  0xb2   : > { %v176_v54 = vsel %vm164_vm4, %v158_v45, %v175_v52  ;;  %v173_v58 = vsel %vm163_vm5, %v170_v48, %v172_v53  ;;  %v169_v0 = vsel %vm163_vm5, %v166_v56, %v168_v57 }
  0xb3   : > { %v177_v59 = vsel %vm163_vm5, %v174_v49, %v176_v54  ;;  %v526_v62 = vmul.u32.u64.low %v178_v55, %v173_v58  ;;  %v527_v63 = vmul.u32.u64.high %v178_v55, %v173_v58, %v526_v62  ;;  %v185_v2 = vmul.u32 %v178_v55, %v169_v0 }
  0xb4   : > { %v523_v60 = vmul.u32.u64.low %v178_v55, %v177_v59  ;;  %v524_v61 = vmul.u32.u64.high %v178_v55, %v177_v59, %v523_v60 }
  0xb5   : > { %v188_v1 = vadd.s32 1, %v527_v63 }
  0xb6   : > { %vm187_vm6 = vc.u32 %v524_v61, %v526_v62  ;;  %v186_v15 = vadd.s32 %v526_v62, %v524_v61 }
  0xb7   : > { %v189_v3 = vsel %vm187_vm6, %v188_v1, %v527_v63 }
  0xb8   : > { %v190_v4 = vadd.s32 %v189_v3, %v185_v2 }
  0xba   : > { %v191_v5 = vadd.s32 536870912, %v190_v4 }
  0xbc   : > { %v192_v6 = vshrl.u32 %v191_v5, 30 }
  0xbe   : > { %v193_v7 = vshll.u32 %v192_v6, 30  ;;  %v216_v28 = vsub.s32 4, %v192_v6 }
  0xc0   : > { %v194_v8 = vsub.s32 %v190_v4, %v193_v7  ;;  %v217_v31 = vsel %vm132_vm8, %v216_v28, %v192_v6 }
  0xc1   : > { %v219_v33 = vsel %vm131_vm9, 0, %v217_v31 }
  0xc2   : > { %v196_v9 = vsub.s32 0, %v194_v8  ;;  %v223_v34 = vadd.s32 3, %v219_v33 }
  0xc4   : > { %v316_v10 = vmin.u32 %v196_v9, %v194_v8  ;;  %v224_v35 = vand.u32 3, %v223_v34 }
  0xc6   : > { %v198_v11 = vclz %v316_v10  ;;  %vm229_vm10 = vcmp.eq.s32.totalorder %v224_v35, 2  ;;  %vm226_vm11 = vcmp.eq.s32.totalorder %v224_v35, 0  ;;  %vm225_vm12 = vcmp.lt.s32.totalorder %v224_v35, 2 }
  0xc8   : > { %v317_v12 = vadd.s32 4294967294, %v198_v11 }
  0xca   : > { %vm318_vm7 = vcmp.lt.s32.totalorder %v317_v12, 0 }
  0xcb   : > { %v201_v13 = vsel %vm318_vm7, 0, %v317_v12 }
  0xcc   : > { %v202_v16 = vsub.s32 32, %v201_v13  ;;  %v206_v17 = vsub.s32 4294967266, %v201_v13  ;;  %v203_v18 = vshll.u32 %v194_v8, %v201_v13 }
  0xce   : > { %v204_v20 = vshrl.u32 %v186_v15, %v202_v16  ;;  %v207_v21 = vadd.s32 127, %v206_v17 }
  0xd0   : > { %v205_v22 = vor.u32 %v204_v20, %v203_v18  ;;  %v208_v23 = vshll.u32 %v207_v21, 23 }
  0xd2   : > { %v209_v24 = vor.u32 4788187, %v208_v23  ;;  %v212_v26 = vcvt.s32.f32 %v205_v22 }
  0xd4   : > { %v210_v25 = vand.u32 2147483647, %v209_v24 }
  0xd6   : > { %v213_v27 = vmul.f32 %v212_v26, %v210_v25 }
  0xd8   : > { %v214_v29 = vxor.u32 2147483648, %v213_v27 }
  0xda   : > { %v215_v30 = vsel %vm132_vm8, %v214_v29, %v213_v27 }
  0xdb   : > { %v218_v32 = vsel %vm131_vm9, %v517_v14, %v215_v30 }
  0xdc   : > { %377 = vcosq.f32 %v218_v32 }
  0xdd   : > { %379 = vsinq.f32 %v218_v32 }
  0xe6   : > { %v378_v36 = vpop.eup %377 }
  0xe7   : > { %v380_v37 = vpop.eup %379  ;;  %v230_v38 = vxor.u32 2147483648, %v378_v36 }
  0xe8   : > { %v227_v39 = vxor.u32 2147483648, %v380_v37 }
  0xe9   : > { %v231_v19 = vsel %vm229_vm10, %v230_v38, %v380_v37 }
  0xea   : > { %v228_v40 = vsel %vm226_vm11, %v378_v36, %v227_v39 }
  0xeb   : > { %v232_v41 = vsel %vm225_vm12, %v228_v40, %v231_v19 }
  0xec   : > { %v233_v42 = vsel %vm222_vm13, nan, %v232_v41 }
  0xed   : > { %234 = vst [vmem:[%s107_s26] sm:$0xff] %v233_v42 }
  0xee   : > { %394 = shalt.err (!%p391_p3)
}
  0xef   : > { %s395_s11 = scalar_lea.hbm %s543_s30, 128  ;;  %s399_s18 = scalar_lea.hbm %s586_s1, 256 }
  0xf0   : > { %p396_p4 = scmp.ne.s32.totalorder %s543_s30, %s395_s11  ;;  %p400_p9 = scmp.lt.u32.totalorder %s543_s30, %s586_s1 }
  0xf1   : > { %p401_p10 = scmp.lt.u32.totalorder %s399_s18, %s395_s11  ;;  %p403_p12 = scmp.lt.u32.totalorder %s395_s11, %s543_s30 }
  0xf2   : > { %p397_p7 = pnand %p396_p4, %p502_p5 }
  0xf3   : > { %p402_p11 = por %p401_p10, %p400_p9 }
  0xf4   : > { %p398_p8 = pneg %p397_p7 }
  0xf5   : > { %p404_p13 = por %p403_p12, %p402_p11 }
  0xf7   : > { %p405_p0 = pnand %p404_p13, %p398_p8 }
  0xf9   : > { %408 = shalt.err (!%p405_p0)
}
  0xfa   : > { %327 = dma.vmem_to_hbm [thread:$0]  (%p502_p5), %s545_s27, 128, %s543_s30, %s236_s2  }
  0xfb PF: > { %p333_p1 = scmp.ge.s32.totalorder %s443_s9, 2  ;;  %s261_s21 = sand.u32 1, %s431_s6  }
  0xfc   : > { %s262_s22 = scalar_lea.sflag [#allocation3], %s261_s21 }
  0xfd   : > { %p330_p2 = pnand %p333_p1, %p506_p6 }
  0xff   : > { %426 = dma.done.wait (!%p330_p2), %s262_s22, 128  }
 0x100   : > { %428 = vsyncadd (!%p330_p2), %s262_s22, 4294967168  ;;  %p11_p3 = scmp.ge.s32.totalorder %s489_s12, 4   ;;  %s589_s6 = smov %s435_s7 }
 0x101   : > { %s590_s7 = smov %s439_s8  ;;  %s591_s8 = smov %s500_s15 }
 0x102   : > { %s592_s9 = smov %s489_s12  ;;  %13 = sbr.rel (!%p11_p3) target bundleno = 3 (0x3), region = 59 }
 0x109   :  { %267 = vsyncpa [#allocation3], 1 }
 0x10a   :  { %269 = vsyncpa [#allocation3 + $0x1], 1 }

</bundles_post_ra>
